<compile_context>
chip_gen: v6e
topology: v6e:2x2x1
jax: 0.10.0
libtpu: 0.0.40
codegen_flags: <defaults>
</compile_context>

<pallas_src>
import functools

import jax
import jax.numpy as jnp
import numpy as np
from jax import lax
from jax.experimental import pallas as pl
from jax.experimental.pallas import tpu as pltpu

BN_EPS = 1e-5      # nn.BatchNorm1d default eps
L2_EPS = 1e-12     # F.normalize default eps
LANE = 128


# --------------------------------------------------------------------------- helpers
def _cdiv(a, b):
    return -(-a // b)


def _round_up(n, m):
    return _cdiv(n, m) * m


def _sublane(itemsize):
    return {4: 8, 2: 16, 1: 32}.get(int(itemsize), 8)


def _device_kind():
    try:
        return jax.devices()[0].device_kind.lower()
    except Exception:
        return ""


def _tpu_vmem_bytes():
    """Physical VMEM per TensorCore, generation aware (conservative fallback)."""
    kind = _device_kind()
    by_kind = (128 << 20) if ("v5" in kind or "v6" in kind) else (64 << 20)
    try:
        info = pltpu.get_tpu_info()
        v = int(getattr(info, "vmem_capacity_bytes", 0) or 0)
        if v:
            return min(v, by_kind)   # never over-commit (v7x: 64 MiB per TC)
    except Exception:
        pass
    return by_kind


def _num_tensorcores():
    """TensorCores sharing 'parallel' grid axes (megacore) on this chip."""
    kind = _device_kind()
    return 2 if ("v7" in kind or "7x" in kind) else 1


# --------------------------------------------------------------------------- kernels
def _head_math(pooled, w1, params, w2):
    """Linear(+bias) -> training-mode BatchNorm1d -> ReLU -> Linear -> L2 normalize.
    H/O are zero-padded to lane multiples by prepare_projection_params(); the padded
    columns stay exactly zero through every step so the math is unchanged."""
    b1 = params[0:1, :]
    gamma = params[1:2, :]
    beta = params[2:3, :]
    h = jnp.dot(pooled, w1, preferred_element_type=jnp.float32) + b1
    mean = jnp.mean(h, axis=0, keepdims=True)
    centered = h - mean
    var = jnp.mean(centered * centered, axis=0, keepdims=True)   # biased var (PyTorch)
    h = centered * lax.rsqrt(var + BN_EPS) * gamma + beta
    h = jnp.maximum(h, 0.0)
    y = jnp.dot(h, w2, preferred_element_type=jnp.float32)
    # F.normalize(dim=1): y / max(||y||, eps) == y * rsqrt(max(sumsq, eps^2))  (EUP)
    sumsq = jnp.sum(y * y, axis=1, keepdims=True)
    return y * lax.rsqrt(jnp.maximum(sumsq, L2_EPS * L2_EPS))


def _accumulate_pool(x_ref, acc_ref, li, *, block_l, true_l, needs_mask):
    """acc += sum_L(x block); masks the (only) partial L tile when present so
    out-of-bounds lanes of the edge block never reach the reduction."""
    x = x_ref[...].astype(jnp.float32)
    if needs_mask:
        col = li * block_l + lax.broadcasted_iota(jnp.int32, x.shape, x.ndim - 1)
        x = jnp.where(col < true_l, x, 0.0)
    acc_ref[...] += jnp.sum(x, axis=-1)


def _fused_kernel(x_ref, w1_ref, params_ref, w2_ref, o_ref, acc_ref, *,
                  block_l, true_l, needs_mask, inv_l):
    """Streamed AdaptiveAvgPool1d over L with the MLP head fused into the final
    reduction step (no pooled HBM round trip, single pallas_call)."""
    li = pl.program_id(0)

    @pl.when(li == 0)
    def _():
        acc_ref[...] = jnp.zeros_like(acc_ref)

    _accumulate_pool(x_ref, acc_ref, li, block_l=block_l, true_l=true_l,
                     needs_mask=needs_mask)

    @pl.when(li == pl.num_programs(0) - 1)
    def _():
        pooled = acc_ref[...] * inv_l
        o_ref[...] = _head_math(pooled, w1_ref[...], params_ref[...],
                                w2_ref[...]).astype(o_ref.dtype)


def _pool_kernel(x_ref, o_ref, *, block_l, true_l, needs_mask, inv_l):
    """Stage-1 pool for the two-stage (large-input) path: the (tb, C) resident output
    block accumulates the streamed sum, scaled to the mean on the last L step."""
    li = pl.program_id(1)

    @pl.when(li == 0)
    def _():
        o_ref[...] = jnp.zeros_like(o_ref)

    _accumulate_pool(x_ref, o_ref, li, block_l=block_l, true_l=true_l,
                     needs_mask=needs_mask)

    @pl.when(li == pl.num_programs(1) - 1)
    def _():
        o_ref[...] = o_ref[...] * inv_l


def _head_kernel(pooled_ref, w1_ref, params_ref, w2_ref, o_ref):
    o_ref[...] = _head_math(pooled_ref[...], w1_ref[...], params_ref[...],
                            w2_ref[...]).astype(o_ref.dtype)


# --------------------------------------------------------------------------- params
def prepare_projection_params(w1, b1, gamma, beta, w2):
    """One-time packing/padding of the head parameters (hoisted off the forward hot
    path). Weights use the (in, out) convention: x @ w1 == x @ w1_pytorch.T.
    Returns (w1_p, params, w2_p); params rows are (bias, gamma, beta), H/O padded
    to lane multiples with zeros (exactly equivalent math)."""
    # TODO(synk): BatchNorm is implemented in training mode (batch statistics), matching a
    # freshly-constructed nn.BatchNorm1d; eval-mode running statistics are not implemented.
    f32 = jnp.float32
    C, H = w1.shape
    O = w2.shape[1]
    h_pad = _round_up(H, LANE)
    o_pad = _round_up(O, LANE)
    w1_p = jnp.zeros((C, h_pad), f32).at[:, :H].set(w1.astype(f32))
    w2_p = jnp.zeros((h_pad, o_pad), f32).at[:H, :O].set(w2.astype(f32))
    params = jnp.zeros((3, h_pad), f32)
    params = params.at[0, :H].set(jnp.reshape(b1, (-1,)).astype(f32))
    params = params.at[1, :H].set(jnp.reshape(gamma, (-1,)).astype(f32))
    params = params.at[2, :H].set(jnp.reshape(beta, (-1,)).astype(f32))
    return w1_p, params, w2_p


# --------------------------------------------------------------------------- tiling
def _choose_pool_tiles(B, C, L, itemsize, block_budget, num_cores):
    """(batch_tile, L_tile) for the two-stage streamed pool."""
    c_eff = _round_up(C, _sublane(itemsize))      # (C, tl) tiles are sublane-padded
    min_tl = min(L, LANE)
    row_bytes = max(1, c_eff * min_tl * itemsize)

    if B <= 8:
        tb = B
    else:
        tb = max(8, (min(B, block_budget // row_bytes) // 8) * 8)
        if num_cores >= 2:
            # Keep >= num_cores "parallel" batch tiles so megacore sharding has work.
            tb = min(tb, max(8, (_cdiv(B, num_cores) // 8) * 8))
        tb = min(tb, (B // 8) * 8)

    if L <= LANE or tb * c_eff * _round_up(L, LANE) * itemsize <= block_budget:
        tl = L                                     # single full-L step, no masking
    else:
        tl = max(LANE, (block_budget // (tb * c_eff * itemsize)) // LANE * LANE)
        tl = min(tl, 8192)
    return tb, tl


# --------------------------------------------------------------------------- forward
@functools.partial(jax.jit, static_argnames=("out_channels", "force_two_stage",
                                             "block_budget_override"))
def projection_forward(x, w1_p, params, w2_p, *, out_channels,
                       force_two_stage=False, block_budget_override=None):
    """Projection forward: pool -> flatten -> linear -> BN(train) -> ReLU -> linear
    -> L2 normalize.  x: (B, C, L); packed params from prepare_projection_params()."""
    B, C, L = x.shape
    h_pad = w1_p.shape[1]
    o_pad = w2_p.shape[1]
    f32 = jnp.float32
    itemsize = jnp.dtype(x.dtype).itemsize

    vmem_bytes = _tpu_vmem_bytes()                       # 64 MiB v7x / 128 MiB v5e,v6e
    num_cores = _num_tensorcores()
    vmem_cap = min((vmem_bytes * 3) // 4, 96 << 20)      # 48 MiB v7x / 96 MiB v5e,v6e
    default_budget = max(2 << 20, min(vmem_bytes // 6, vmem_cap // 3))

    c_eff = _round_up(C, _sublane(itemsize))             # sublane inflation of (C, tl)
    x_bytes = B * C * L * itemsize

    # VMEM resident in the fused kernel besides the streamed x block:
    # pooled accumulator + (double-buffered) output + packed weights (all f32).
    resident = 4 * (B * C + 2 * B * o_pad
                    + 2 * (C * h_pad + 3 * h_pad + h_pad * o_pad))
    fused_fits = resident <= vmem_bytes // 4
    # On multi-TC chips prefer the two-stage path only when streaming x dominates:
    # B-parallel pool tiles then drive both cores' DMA pipes.
    prefer_split = num_cores >= 2 and B >= 16 and x_bytes >= (64 << 20)
    use_fused = fused_fits and not (prefer_split or force_two_stage)

    if use_fused:
        if block_budget_override is not None:
            block_budget = int(block_budget_override)
        else:
            block_budget = min(default_budget, max(2 << 20, (vmem_cap - resident) // 3))

        # L tile: one full-L step when it fits, else lane-multiple streamed tiles.
        if L <= LANE or B * c_eff * _round_up(L, LANE) * itemsize <= block_budget:
            tl = L
        else:
            tl = max(LANE, (block_budget // max(1, B * c_eff * itemsize)) // LANE * LANE)
            tl = min(tl, 8192)
        grid_l = _cdiv(L, tl)
        needs_mask = grid_l * tl != L
        x_block_bytes = B * c_eff * _round_up(tl, LANE) * itemsize
        vmem_limit = int(min(vmem_cap,
                             max(32 << 20, 2 * x_block_bytes + resident + (4 << 20))))

        out_p = pl.pallas_call(
            functools.partial(_fused_kernel, block_l=tl, true_l=L,
                              needs_mask=needs_mask, inv_l=1.0 / L),
            out_shape=jax.ShapeDtypeStruct((B, o_pad), f32),
            grid=(grid_l,),
            in_specs=[
                pl.BlockSpec((B, C, tl), lambda l: (0, 0, l)),    # streamed over L
                pl.BlockSpec((C, h_pad), lambda l: (0, 0)),       # fetched once
                pl.BlockSpec((3, h_pad), lambda l: (0, 0)),
                pl.BlockSpec((h_pad, o_pad), lambda l: (0, 0)),
            ],
            out_specs=pl.BlockSpec((B, o_pad), lambda l: (0, 0)),  # resident, lane-dense
            scratch_shapes=[pltpu.VMEM((B, C), f32)],
            compiler_params=pltpu.CompilerParams(
                dimension_semantics=("arbitrary",),
                vmem_limit_bytes=vmem_limit,
            ),
        )(x, w1_p, params, w2_p)
        return out_p[:, :out_channels]

    # ---- two-stage path: B-"parallel" streamed pool, then the head on (B, C) ------
    block_budget = int(block_budget_override) if block_budget_override is not None \
        else default_budget
    tb, tl = _choose_pool_tiles(B, C, L, itemsize, block_budget, num_cores)
    grid_b = _cdiv(B, tb)
    grid_l = _cdiv(L, tl)
    needs_mask = grid_l * tl != L
    x_block_bytes = tb * c_eff * _round_up(tl, LANE) * itemsize
    vmem_limit = int(min(vmem_cap, max(32 << 20, 4 * x_block_bytes + (4 << 20))))

    pooled = pl.pallas_call(
        functools.partial(_pool_kernel, block_l=tl, true_l=L,
                          needs_mask=needs_mask, inv_l=1.0 / L),
        out_shape=jax.ShapeDtypeStruct((B, C), f32),
        grid=(grid_b, grid_l),
        in_specs=[pl.BlockSpec((tb, C, tl), lambda i, l: (i, 0, l))],
        out_specs=pl.BlockSpec((tb, C), lambda i, l: (i, 0)),
        compiler_params=pltpu.CompilerParams(
            dimension_semantics=("parallel", "arbitrary"),
            vmem_limit_bytes=vmem_limit,
        ),
    )(x)

    # Head on the pooled (B, C) tensor; BatchNorm couples the whole batch, so the
    # batch stays resident inside one kernel invocation.
    # TODO(synk): extremely large B (pooled + padded output > ~1/4 VMEM) would need a
    # B-tiled two-pass BatchNorm head; not implemented here.
    full = lambda shape: pl.BlockSpec(shape, lambda: tuple(0 for _ in shape))
    out_p = pl.pallas_call(
        _head_kernel,
        out_shape=jax.ShapeDtypeStruct((B, o_pad), f32),
        grid=(),
        in_specs=[full((B, C)), full((C, h_pad)), full((3, h_pad)),
                  full((h_pad, o_pad))],
        out_specs=full((B, o_pad)),
    )(pooled, w1_p, params, w2_p)
    return out_p[:, :out_channels]


# --------------------------------------------------------------------------- reference
def projection_reference(x, w1, b1, gamma, beta, w2):
    pooled = jnp.mean(x, axis=-1)
    h = pooled @ w1 + b1
    mean = jnp.mean(h, axis=0, keepdims=True)
    var = jnp.mean((h - mean) ** 2, axis=0, keepdims=True)
    h = (h - mean) / jnp.sqrt(var + BN_EPS) * gamma + beta
    h = jnp.maximum(h, 0.0)
    y = h @ w2
    n = jnp.sqrt(jnp.sum(y * y, axis=1, keepdims=True))
    return y / jnp.maximum(n, L2_EPS)


if __name__ == "__main__":
    # Small shapes consistent with the module's forward (B, C, L) + (H, O).
    B, C, L = 16, 4, 1000     # batch, in_channels, sequence length
    H, O = 32, 16             # hidden_dim, out_channels

    key = jax.random.PRNGKey(0)
    kx, kw1, kb1, kw2 = jax.random.split(key, 4)

    x = jax.random.normal(kx, (B, C, L), dtype=jnp.float32)
    w1 = jax.random.normal(kw1, (C, H), dtype=jnp.float32) * (1.0 / np.sqrt(C))
    b1 = jax.random.normal(kb1, (H,), dtype=jnp.float32) * 0.1
    gamma = jnp.ones((H,), dtype=jnp.float32)    # BatchNorm weight init
    beta = jnp.zeros((H,), dtype=jnp.float32)    # BatchNorm bias init
    w2 = jax.random.normal(kw2, (H, O), dtype=jnp.float32) * (1.0 / np.sqrt(H))

    # One-time parameter packing/padding (hoisted off the forward hot path).
    w1_p, params, w2_p = prepare_projection_params(w1, b1, gamma, beta, w2)

    ref = np.asarray(projection_reference(x, w1, b1, gamma, beta, w2))

    # 1) Default fused pool+head kernel (single pallas_call).
    out = jax.block_until_ready(
        projection_forward(x, w1_p, params, w2_p, out_channels=O))
    np.testing.assert_allclose(np.asarray(out), ref, rtol=1e-5, atol=1e-5)

    # 2) Fused path with tiny streamed blocks: exercises the multi-step masked
    #    L reduction used for large inputs.
    out_small = jax.block_until_ready(
        projection_forward(x, w1_p, params, w2_p, out_channels=O,
                           block_budget_override=64 * 1024))
    np.testing.assert_allclose(np.asarray(out_small), ref, rtol=1e-5, atol=1e-5)

    # 3) Two-stage path (B-tiled streamed pool + separate head kernel), the
    #    large-input / megacore fallback.
    out_two = jax.block_until_ready(
        projection_forward(x, w1_p, params, w2_p, out_channels=O,
                           force_two_stage=True, block_budget_override=64 * 1024))
    np.testing.assert_allclose(np.asarray(out_two), ref, rtol=1e-5, atol=1e-5)

    print("KERNEL_OK")
</pallas_src>

<mosaic_0001>
module attributes {stable_mosaic.version = 11 : i64} {
  func.func @_fused_kernel(%arg0: i32, %arg1: memref<16x4x1000xf32, #tpu.memory_space<vmem>>, %arg2: memref<4x128xf32, #tpu.memory_space<vmem>>, %arg3: memref<3x128xf32, #tpu.memory_space<vmem>>, %arg4: memref<128x128xf32, #tpu.memory_space<vmem>>, %arg5: memref<16x128xf32, #tpu.memory_space<vmem>>, %arg6: memref<16x4xf32, #tpu.memory_space<vmem>>) attributes {dimension_semantics = [#tpu.dimension_semantics<arbitrary>], iteration_bounds = array<i64: 1>, scalar_prefetch = 0 : i64, scratch_operands = 1 : i64, tpu.core_type = #tpu.core_type<tc>, window_params = [{transform_indices = @transform_0, window_bounds = array<i64: 16, 4, 1000>}, {pipeline_mode = #tpu.pipeline_mode<synchronous>, transform_indices = @transform_1, window_bounds = array<i64: 4, 128>}, {pipeline_mode = #tpu.pipeline_mode<synchronous>, transform_indices = @transform_2, window_bounds = array<i64: 3, 128>}, {pipeline_mode = #tpu.pipeline_mode<synchronous>, transform_indices = @transform_3, window_bounds = array<i64: 128, 128>}, {pipeline_mode = #tpu.pipeline_mode<synchronous>, transform_indices = @transform_4, window_bounds = array<i64: 16, 128>}]} {
    %c0_i32 = arith.constant 0 : i32
    %0 = arith.cmpi eq, %arg0, %c0_i32 : i32
    %1 = arith.extui %0 : i1 to i32
    %c0_i32_0 = arith.constant 0 : i32
    %2 = arith.cmpi ne, %1, %c0_i32_0 : i32
    scf.if %2 {
      %cst_9 = arith.constant 0.000000e+00 : f32
      %11 = vector.broadcast %cst_9 : f32 to vector<16x4xf32>
      %c0_10 = arith.constant 0 : index
      %c0_11 = arith.constant 0 : index
      %12 = vector.load %arg6[%c0_10, %c0_11] : memref<16x4xf32, #tpu.memory_space<vmem>>, vector<16x4xf32>
      tpu.vector_store %arg6[%c0_10, %c0_11], %11 {strides = array<i32>} : memref<16x4xf32, #tpu.memory_space<vmem>>, vector<16x4xf32>,
    } else {
    }
    %c0 = arith.constant 0 : index
    %c0_1 = arith.constant 0 : index
    %c0_2 = arith.constant 0 : index
    %3 = vector.load %arg1[%c0, %c0_1, %c0_2] : memref<16x4x1000xf32, #tpu.memory_space<vmem>>, vector<16x4x1000xf32>
    %c0_3 = arith.constant 0 : index
    %c0_4 = arith.constant 0 : index
    %4 = vector.load %arg6[%c0_3, %c0_4] : memref<16x4xf32, #tpu.memory_space<vmem>>, vector<16x4xf32>
    %cst = arith.constant dense<0.000000e+00> : vector<16x4xf32>
    %5 = vector.multi_reduction <add>, %3, %cst [2] : vector<16x4x1000xf32> to vector<16x4xf32>
    %6 = arith.addf %4, %5 : vector<16x4xf32>
    %c0_5 = arith.constant 0 : index
    %c0_6 = arith.constant 0 : index
    %7 = vector.load %arg6[%c0_5, %c0_6] : memref<16x4xf32, #tpu.memory_space<vmem>>, vector<16x4xf32>
    tpu.vector_store %arg6[%c0_5, %c0_6], %6 {strides = array<i32>} : memref<16x4xf32, #tpu.memory_space<vmem>>, vector<16x4xf32>,
    %c0_i32_7 = arith.constant 0 : i32
    %8 = arith.cmpi eq, %arg0, %c0_i32_7 : i32
    %9 = arith.extui %8 : i1 to i32
    %c0_i32_8 = arith.constant 0 : i32
    %10 = arith.cmpi ne, %9, %c0_i32_8 : i32
    scf.if %10 {
      %c0_9 = arith.constant 0 : index
      %c0_10 = arith.constant 0 : index
      %11 = vector.load %arg6[%c0_9, %c0_10] : memref<16x4xf32, #tpu.memory_space<vmem>>, vector<16x4xf32>
      %cst_11 = arith.constant 1.000000e-03 : f32
      %12 = vector.broadcast %cst_11 : f32 to vector<16x4xf32>
      %13 = arith.mulf %11, %12 : vector<16x4xf32>
      %c0_12 = arith.constant 0 : index
      %c0_13 = arith.constant 0 : index
      %14 = vector.load %arg2[%c0_12, %c0_13] : memref<4x128xf32, #tpu.memory_space<vmem>>, vector<4x128xf32>
      %c0_14 = arith.constant 0 : index
      %c0_15 = arith.constant 0 : index
      %15 = vector.load %arg3[%c0_14, %c0_15] : memref<3x128xf32, #tpu.memory_space<vmem>>, vector<3x128xf32>
      %c0_16 = arith.constant 0 : index
      %c0_17 = arith.constant 0 : index
      %16 = vector.load %arg4[%c0_16, %c0_17] : memref<128x128xf32, #tpu.memory_space<vmem>>, vector<128x128xf32>
      %17 = vector.extract_strided_slice %15 {offsets = [0, 0], sizes = [1, 128], strides = [1, 1]} : vector<3x128xf32> to vector<1x128xf32>
      %18 = vector.extract_strided_slice %15 {offsets = [1, 0], sizes = [1, 128], strides = [1, 1]} : vector<3x128xf32> to vector<1x128xf32>
      %19 = vector.extract_strided_slice %15 {offsets = [2, 0], sizes = [1, 128], strides = [1, 1]} : vector<3x128xf32> to vector<1x128xf32>
      %cst_18 = arith.constant dense<0.000000e+00> : vector<16x128xf32>
      %20 = tpu.matmul %13, %14, %cst_18 {dimension_numbers = #tpu.dot_dimension_numbers<[1], [0], [0], [1], [0, 0, 1, 1], [], []>} : vector<16x4xf32>, vector<4x128xf32>, vector<16x128xf32> -> vector<16x128xf32>
      %21 = vector.broadcast %17 : vector<1x128xf32> to vector<16x128xf32>
      %22 = arith.addf %20, %21 : vector<16x128xf32>
      %cst_19 = arith.constant dense<0.000000e+00> : vector<128xf32>
      %23 = vector.multi_reduction <add>, %22, %cst_19 [0] : vector<16x128xf32> to vector<128xf32>
      %24 = vector.shape_cast %23 : vector<128xf32> to vector<1x128xf32>
      %cst_20 = arith.constant 1.600000e+01 : f32
      %25 = vector.broadcast %cst_20 : f32 to vector<1x128xf32>
      %26 = arith.divf %24, %25 : vector<1x128xf32>
      %27 = vector.broadcast %26 : vector<1x128xf32> to vector<16x128xf32>
      %28 = arith.subf %22, %27 : vector<16x128xf32>
      %29 = arith.mulf %28, %28 : vector<16x128xf32>
      %cst_21 = arith.constant dense<0.000000e+00> : vector<128xf32>
      %30 = vector.multi_reduction <add>, %29, %cst_21 [0] : vector<16x128xf32> to vector<128xf32>
      %31 = vector.shape_cast %30 : vector<128xf32> to vector<1x128xf32>
      %cst_22 = arith.constant 1.600000e+01 : f32
      %32 = vector.broadcast %cst_22 : f32 to vector<1x128xf32>
      %33 = arith.divf %31, %32 : vector<1x128xf32>
      %cst_23 = arith.constant 9.99999974E-6 : f32
      %34 = vector.broadcast %cst_23 : f32 to vector<1x128xf32>
      %35 = arith.addf %33, %34 : vector<1x128xf32>
      %36 = math.rsqrt %35 : vector<1x128xf32>
      %37 = vector.broadcast %36 : vector<1x128xf32> to vector<16x128xf32>
      %38 = arith.mulf %28, %37 : vector<16x128xf32>
      %39 = vector.broadcast %18 : vector<1x128xf32> to vector<16x128xf32>
      %40 = arith.mulf %38, %39 : vector<16x128xf32>
      %41 = vector.broadcast %19 : vector<1x128xf32> to vector<16x128xf32>
      %42 = arith.addf %40, %41 : vector<16x128xf32>
      %cst_24 = arith.constant 0.000000e+00 : f32
      %43 = vector.broadcast %cst_24 : f32 to vector<16x128xf32>
      %44 = arith.maximumf %42, %43 : vector<16x128xf32>
      %cst_25 = arith.constant dense<0.000000e+00> : vector<16x128xf32>
      %45 = tpu.matmul %44, %16, %cst_25 {dimension_numbers = #tpu.dot_dimension_numbers<[1], [0], [0], [1], [0, 0, 1, 1], [], []>} : vector<16x128xf32>, vector<128x128xf32>, vector<16x128xf32> -> vector<16x128xf32>
      %46 = arith.mulf %45, %45 : vector<16x128xf32>
      %cst_26 = arith.constant dense<0.000000e+00> : vector<16xf32>
      %47 = vector.multi_reduction <add>, %46, %cst_26 [1] : vector<16x128xf32> to vector<16xf32>
      %48 = vector.shape_cast %47 : vector<16xf32> to vector<16x1xf32>
      %cst_27 = arith.constant 1.000000e-24 : f32
      %49 = vector.broadcast %cst_27 : f32 to vector<16x1xf32>
      %50 = arith.maximumf %48, %49 : vector<16x1xf32>
      %51 = math.rsqrt %50 : vector<16x1xf32>
      %52 = vector.broadcast %51 : vector<16x1xf32> to vector<16x128xf32>
      %53 = arith.mulf %45, %52 : vector<16x128xf32>
      %c0_28 = arith.constant 0 : index
      %c0_29 = arith.constant 0 : index
      %54 = vector.load %arg5[%c0_28, %c0_29] : memref<16x128xf32, #tpu.memory_space<vmem>>, vector<16x128xf32>
      tpu.vector_store %arg5[%c0_28, %c0_29], %53 {strides = array<i32>} : memref<16x128xf32, #tpu.memory_space<vmem>>, vector<16x128xf32>,
    } else {
    }
    return
  }
  func.func @transform_0(%arg0: i32) -> (i32, i32, i32) {
    %c0_i32 = arith.constant 0 : i32
    %c0_i32_0 = arith.constant 0 : i32
    %c0_i32_1 = arith.constant 0 : i32
    return %c0_i32, %c0_i32_0, %arg0 : i32, i32, i32
  }
  func.func @transform_1(%arg0: i32) -> (i32, i32) {
    %c0_i32 = arith.constant 0 : i32
    %c0_i32_0 = arith.constant 0 : i32
    %c0_i32_1 = arith.constant 0 : i32
    return %c0_i32, %c0_i32_0 : i32, i32
  }
  func.func @transform_2(%arg0: i32) -> (i32, i32) {
    %c0_i32 = arith.constant 0 : i32
    %c0_i32_0 = arith.constant 0 : i32
    %c0_i32_1 = arith.constant 0 : i32
    return %c0_i32, %c0_i32_0 : i32, i32
  }
  func.func @transform_3(%arg0: i32) -> (i32, i32) {
    %c0_i32 = arith.constant 0 : i32
    %c0_i32_0 = arith.constant 0 : i32
    %c0_i32_1 = arith.constant 0 : i32
    return %c0_i32, %c0_i32_0 : i32, i32
  }
  func.func @transform_4(%arg0: i32) -> (i32, i32) {
    %c0_i32 = arith.constant 0 : i32
    %c0_i32_0 = arith.constant 0 : i32
    %c0_i32_1 = arith.constant 0 : i32
    return %c0_i32, %c0_i32_0 : i32, i32
  }
}

</mosaic_0001>

<bundles_post_ra>
// kernel: projection_forward.1
= control target key start
LH: loop header
LB: loop body
LE: loop exit
PB: predicated region body
PF: predicated region fallthrough
CT: control target
= control target key end

     0   :  { %9 = vsyncpa [#allocation4], 0  ;;  %s1442_s0 = inlined_call_operand.hbm [shape: f32[16,4,1000], index: 0, kind: input, shape index: {}]   ;;  %s1443_s1 = inlined_call_operand.hbm [shape: f32[4,128], index: 1, kind: input, shape index: {}]   ;;  %s1444_s2 = inlined_call_operand.hbm [shape: f32[3,128], index: 2, kind: input, shape index: {}]   ;;  %s1445_s3 = inlined_call_operand.hbm [shape: f32[128,128], index: 3, kind: input, shape index: {}]   ;;  %s1446_s4 = inlined_call_operand.hbm [shape: f32[16,128], index: 4, kind: output, shape index: {}]  }
   0x1   :  { %10 = vsyncpa [#allocation7], 0 }
   0x2   :  { %11 = vsyncpa [#allocation10], 0 }
   0x3   :  { %12 = vsyncpa [#allocation5], 0  ;;  %s1230_s15 = smov [#allocation6]   ;;  %s1231_s17 = smov [#allocation3]  }
   0x4   :  { %s31_s16 = sshll.u32 %s1230_s15, 4  ;;  %s18_s18 = sshll.u32 %s1231_s17, 4  ;;  %s32_s16 = int_to_ptr.vmem [resolvable:$true] %s31_s16  ;;  %s19_s18 = int_to_ptr.vmem [resolvable:$true] %s18_s18 }
   0x5   :  { %s1130_s19 = scalar_lea.vmem %s32_s16, 64  ;;  %p1135_p1 = scmp.lt.s32.totalorder %s32_s16, %s32_s16 }
   0x6   :  { %p1131_p0 = scmp.ne.s32.totalorder %s32_s16, %s1130_s19  ;;  %p1136_p2 = scmp.lt.s32.totalorder %s1130_s19, %s1130_s19 }
   0x8   :  { %p1137_p3 = por %p1136_p2, %p1135_p1 }
   0xa   :  { %p1138_p4 = pnand %p1137_p3, %p1131_p0 }
   0xc   :  { %1141 = shalt.err (!%p1138_p4)
}
   0xd   :  { %34 = dma.hbm_to_vmem [thread:$0]  %s1443_s1, 64, %s32_s16, [#allocation7]  }
   0xe   :  { %s1150_s22 = scalar_lea.vmem %s19_s18, 8192  ;;  %p1155_p6 = scmp.lt.s32.totalorder %s19_s18, %s19_s18 }
   0xf   :  { %p1151_p5 = scmp.ne.s32.totalorder %s19_s18, %s1150_s22  ;;  %p1156_p7 = scmp.lt.s32.totalorder %s1150_s22, %s1150_s22 }
  0x11   :  { %p1157_p8 = por %p1156_p7, %p1155_p6 }
  0x13   :  { %p1158_p9 = pnand %p1157_p8, %p1151_p5 }
  0x15   :  { %1161 = shalt.err (!%p1158_p9)
}
  0x16   :  { %s1232_s23 = smov 512   ;;  %s1233_s24 = smov 32  }
  0x17   :  { %24 = dma.hbm_to_vmem [thread:$0]  %s1442_s0, 8192, %s19_s18, [#allocation4], %s1232_s23, %s1232_s23, %s1233_s24  }
  0x18   :  { %s1234_s27 = smov [#allocation8]   ;;  %s1235_s29 = smov [#allocation9]  }
  0x19   :  { %s41_s28 = sshll.u32 %s1234_s27, 4  ;;  %s50_s30 = sshll.u32 %s1235_s29, 4  ;;  %s42_s28 = int_to_ptr.vmem [resolvable:$true] %s41_s28  ;;  %s51_s30 = int_to_ptr.vmem [resolvable:$true] %s50_s30 }
  0x1a   :  { %s1170_s1 = scalar_lea.vmem %s42_s28, 64  ;;  %p1175_p11 = scmp.lt.s32.totalorder %s42_s28, %s42_s28 }
  0x1b   :  { %p1171_p10 = scmp.ne.s32.totalorder %s42_s28, %s1170_s1  ;;  %p1176_p12 = scmp.lt.s32.totalorder %s1170_s1, %s1170_s1 }
  0x1d   :  { %p1177_p13 = por %p1176_p12, %p1175_p11 }
  0x1f   :  { %p1178_p0 = pnand %p1177_p13, %p1171_p10 }
  0x21   :  { %1181 = shalt.err (!%p1178_p0)
}
  0x22   :  { %44 = dma.hbm_to_vmem [thread:$0]  %s1444_s2, 64, %s42_s28, [#allocation7]  }
  0x23   :  { %s1190_s7 = scalar_lea.vmem %s51_s30, 2048  ;;  %p1195_p2 = scmp.lt.s32.totalorder %s51_s30, %s51_s30 }
  0x24   :  { %p1191_p1 = scmp.ne.s32.totalorder %s51_s30, %s1190_s7  ;;  %p1196_p3 = scmp.lt.s32.totalorder %s1190_s7, %s1190_s7 }
  0x26   :  { %p1197_p4 = por %p1196_p3, %p1195_p2 }
  0x28   :  { %p1198_p5 = pnand %p1197_p4, %p1191_p1 }
  0x2a   :  { %1201 = shalt.err (!%p1198_p5)
}
  0x2b   :  { %s1236_s0 = smov 128   ;;  %s1237_s8 = smov 8  }
  0x2c   :  { %56 = dma.hbm_to_vmem [thread:$0]  %s1445_s3, 2048, %s51_s30, [#allocation10], %s1236_s0, %s1236_s0, %s1237_s8  }
  0x2d   :  { %1222 = dma.done.wait [#allocation4], 8192  }
  0x2e   :  { %1223 = vsyncadd [#allocation4], 4294959104 }
  0x2f   :  { %1224 = dma.done.wait [#allocation7], 128  }
  0x30   :  { %1225 = vsyncadd [#allocation7], 4294967168 }
  0x31   :  { %1226 = dma.done.wait [#allocation10], 2048  }
  0x32   :  { %1227 = vsyncadd [#allocation10], 4294965248  ;;  %vm334_vm0 = vcmask 1043456   ;;  %v84_v0 = vld [vmem:[#allocation3 + $0x40] sm:$0xff]  ;;  %v85_v1 = vld [vmem:[#allocation3 + $0x48] sm:$0xff]  ;;  %vm348_vm1 = vcmask 846848  }
  0x33   :  { %v86_v2 = vld [vmem:[#allocation3 + $0x50] sm:$0xff]  ;;  %v87_v3 = vld [vmem:[#allocation3 + $0x58] sm:$0xff]  ;;  %v214_v4 = vcombine.high %v84_v0, %v84_v0  ;;  %v215_v5 = vcombine.high %v85_v1, %v85_v1  ;;  %v370_v6 = vsel %vm334_vm0, %v84_v0, 0.0  ;;  %v76_v7 = vld [vmem:[#allocation3] sm:$0xff]  ;;  %v373_v11 = vsel %vm334_vm0, %v85_v1, 0.0  ;;  %s1239_s2 = smov [#allocation11]  }
  0x34   :  { %v77_v8 = vld [vmem:[#allocation3 + $0x8] sm:$0xff]  ;;  %v216_v9 = vcombine.high %v86_v2, %v86_v2  ;;  %v78_v12 = vld [vmem:[#allocation3 + $0x10] sm:$0xff]  ;;  %v206_v13 = vcombine.high %v76_v7, %v76_v7  ;;  %v217_v14 = vcombine.high %v87_v3, %v87_v3  ;;  %v377_v16 = vsel %vm334_vm0, %v86_v2, 0.0  ;;  %v79_v17 = vld [vmem:[#allocation3 + $0x18] sm:$0xff]  ;;  %s964_s3 = sshll.u32 %s1239_s2, 4  ;;  %s965_s3 = int_to_ptr.vmem [resolvable:$true] %s964_s3 }
  0x35   :  { %v371_v10 = vsel %vm334_vm0, %v214_v4, 0.0  ;;  %v207_v18 = vcombine.high %v77_v8, %v77_v8  ;;  %v108_v19 = vld [vmem:[#allocation3 + $0x100] sm:$0xff]  ;;  %v375_v20 = vsel %vm334_vm0, %v215_v5, 0.0  ;;  %v335_v21 = vsel %vm334_vm0, %v76_v7, 0.0  ;;  %v109_v24 = vld [vmem:[#allocation3 + $0x108] sm:$0xff]  ;;  %v110_v36 = vld [vmem:[#allocation3 + $0x110] sm:$0xff]  ;;  %p1207_p7 = scmp.lt.s32.totalorder %s965_s3, %s965_s3 }
  0x36   :  { %v372_v15 = vadd.f32 %v371_v10, %v370_v6  ;;  %v336_v22 = vsel %vm334_vm0, %v206_v13, 0.0  ;;  %v338_v23 = vsel %vm334_vm0, %v77_v8, 0.0  ;;  %v381_v26 = vsel %vm334_vm0, %v87_v3, 0.0  ;;  %v80_v42 = vld [vmem:[#allocation3 + $0x20] sm:$0xff]  ;;  %v111_v46 = vld [vmem:[#allocation3 + $0x118] sm:$0xff]  ;;  %v81_v48 = vld [vmem:[#allocation3 + $0x28] sm:$0xff] }
  0x37   :  { %v208_v27 = vcombine.high %v78_v12, %v78_v12  ;;  %v337_v28 = vadd.f32 %v336_v22, %v335_v21  ;;  %v379_v29 = vsel %vm334_vm0, %v216_v9, 0.0  ;;  %v209_v30 = vcombine.high %v79_v17, %v79_v17  ;;  %v82_v56 = vld [vmem:[#allocation3 + $0x30] sm:$0xff]  ;;  %v88_v2 = vld [vmem:[#allocation3 + $0x60] sm:$0xff]  ;;  %v89_v7 = vld [vmem:[#allocation3 + $0x68] sm:$0xff]  ;;  %s1202_s11 = scalar_lea.vmem %s965_s3, 256 }
  0x38   :  { %v374_v25 = vadd.f32 %v373_v11, %v372_v15  ;;  %v340_v31 = vsel %vm334_vm0, %v207_v18, 0.0  ;;  %v238_v32 = vcombine.high %v108_v19, %v108_v19  ;;  %v383_v34 = vsel %vm348_vm1, %v217_v14, 0.0  ;;  %v83_v11 = vld [vmem:[#allocation3 + $0x38] sm:$0xff]  ;;  %p1203_p6 = scmp.ne.s32.totalorder %s965_s3, %s1202_s11  ;;  %p1208_p8 = scmp.lt.s32.totalorder %s1202_s11, %s1202_s11 }
  0x39   :  { %v339_v35 = vadd.f32 %v338_v23, %v337_v28  ;;  %v239_v37 = vcombine.high %v109_v24, %v109_v24  ;;  %v342_v38 = vsel %vm334_vm0, %v78_v12, 0.0  ;;  %v472_v39 = vsel %vm334_vm0, %v108_v19, 0.0 }
  0x3a   :  { %v376_v33 = vadd.f32 %v375_v20, %v374_v25  ;;  %v473_v40 = vsel %vm334_vm0, %v238_v32, 0.0  ;;  %v475_v41 = vsel %vm334_vm0, %v109_v24, 0.0  ;;  %v344_v45 = vsel %vm334_vm0, %v208_v27, 0.0  ;;  %v90_v20 = vld [vmem:[#allocation3 + $0x70] sm:$0xff]  ;;  %p1209_p9 = por %p1208_p8, %p1207_p7 }
  0x3b   :  { %v341_v44 = vadd.f32 %v340_v31, %v339_v35  ;;  %v474_v47 = vadd.f32 %v473_v40, %v472_v39  ;;  %v346_v49 = vsel %vm334_vm0, %v79_v17, 0.0  ;;  %v349_v50 = vsel %vm348_vm1, %v209_v30, 0.0  ;;  %v113_v31 = vld [vmem:[#allocation3 + $0x128] sm:$0xff] }
  0x3c   :  { %v378_v43 = vadd.f32 %v377_v16, %v376_v33  ;;  %v240_v51 = vcombine.high %v110_v36, %v110_v36  ;;  %v477_v52 = vsel %vm334_vm0, %v239_v37, 0.0  ;;  %v210_v57 = vcombine.high %v80_v42, %v80_v42  ;;  %v91_v37 = vld [vmem:[#allocation3 + $0x78] sm:$0xff]  ;;  %p1210_p10 = pnand %p1209_p9, %p1203_p6 }
  0x3d   :  { %v343_v54 = vadd.f32 %v342_v38, %v341_v44  ;;  %v476_v55 = vadd.f32 %v475_v41, %v474_v47  ;;  %v241_v58 = vcombine.high %v111_v46, %v111_v46  ;;  %v479_v59 = vsel %vm334_vm0, %v110_v36, 0.0 }
  0x3e   :  { %v380_v53 = vadd.f32 %v379_v29, %v378_v43  ;;  %v211_v60 = vcombine.high %v81_v48, %v81_v48  ;;  %v353_v61 = vsel %vm334_vm0, %v80_v42, 0.0  ;;  %v354_v1 = vsel %vm334_vm0, %v210_v57, 0.0  ;;  %v114_v43 = vld [vmem:[#allocation3 + $0x130] sm:$0xff] }
  0x3f   :  { %v345_v63 = vadd.f32 %v344_v45, %v343_v54  ;;  %v478_v0 = vadd.f32 %v477_v52, %v476_v55  ;;  %v481_v3 = vsel %vm334_vm0, %v240_v51, 0.0  ;;  %v212_v4 = vcombine.high %v82_v56, %v82_v56  ;;  %v115_v54 = vld [vmem:[#allocation3 + $0x138] sm:$0xff] }
  0x40   :  { %v382_v62 = vadd.f32 %v381_v26, %v380_v53  ;;  %v355_v5 = vadd.f32 %v354_v1, %v353_v61  ;;  %v356_v6 = vsel %vm334_vm0, %v81_v48, 0.0  ;;  %v358_v12 = vsel %vm334_vm0, %v211_v60, 0.0  ;;  %v112_v26 = vld [vmem:[#allocation3 + $0x120] sm:$0xff] }
  0x41   :  { %v347_v9 = vadd.f32 %v346_v49, %v345_v63  ;;  %v480_v10 = vadd.f32 %v479_v59, %v478_v0  ;;  %v483_v13 = vsel %vm334_vm0, %v111_v46, 0.0  ;;  %v485_v14 = vsel %vm348_vm1, %v241_v58, 0.0  ;;  %v92_v49 = vld [vmem:[#allocation3 + $0x80] sm:$0xff] }
  0x42   :  { %v384_v8 = vadd.f32 %v383_v34, %v382_v62  ;;  %v357_v15 = vadd.f32 %v356_v6, %v355_v5  ;;  %v218_v16 = vcombine.high %v88_v2, %v88_v2  ;;  %v360_v19 = vsel %vm334_vm0, %v82_v56, 0.0  ;;  %v116_v5 = vld [vmem:[#allocation3 + $0x140] sm:$0xff] }
  0x43   :  { %v350_v17 = vadd.f32 %v349_v50, %v347_v9  ;;  %v482_v18 = vadd.f32 %v481_v3, %v480_v10  ;;  %v219_v21 = vcombine.high %v89_v7, %v89_v7  ;;  %v213_v22 = vcombine.high %v83_v11, %v83_v11  ;;  %v93_v50 = vld [vmem:[#allocation3 + $0x88] sm:$0xff]  ;;  %v94_v3 = vld [vmem:[#allocation3 + $0x90] sm:$0xff] }
  0x44   :  { %385 = vadd.xlane.f32.xlu1 %v384_v8  ;;  %v359_v23 = vadd.f32 %v358_v12, %v357_v15  ;;  %v387_v24 = vsel %vm334_vm0, %v88_v2, 0.0  ;;  %v388_v25 = vsel %vm334_vm0, %v218_v16, 0.0  ;;  %v362_v28 = vsel %vm334_vm0, %v212_v4, 0.0  ;;  %v117_v10 = vld [vmem:[#allocation3 + $0x148] sm:$0xff]  ;;  %v95_v16 = vld [vmem:[#allocation3 + $0x98] sm:$0xff] }
  0x45   :  { %351 = vadd.xlane.f32.xlu0 %v350_v17  ;;  %v484_v27 = vadd.f32 %v483_v13, %v482_v18  ;;  %v389_v29 = vadd.f32 %v388_v25, %v387_v24  ;;  %v390_v30 = vsel %vm334_vm0, %v89_v7, 0.0  ;;  %v220_v33 = vcombine.high %v90_v20, %v90_v20 }
  0x46   :  { %v361_v32 = vadd.f32 %v360_v19, %v359_v23  ;;  %v392_v34 = vsel %vm334_vm0, %v219_v21, 0.0  ;;  %v364_v36 = vsel %vm334_vm0, %v83_v11, 0.0  ;;  %v242_v39 = vcombine.high %v112_v26, %v112_v26  ;;  %v118_v23 = vld [vmem:[#allocation3 + $0x150] sm:$0xff] }
  0x47   :  { %v486_v35 = vadd.f32 %v485_v14, %v484_v27  ;;  %v391_v38 = vadd.f32 %v390_v30, %v389_v29  ;;  %v366_v41 = vsel %vm348_vm1, %v213_v22, 0.0  ;;  %v394_v42 = vsel %vm334_vm0, %v90_v20, 0.0  ;;  %v96_v29 = vld [vmem:[#allocation3 + $0xa0] sm:$0xff] }
  0x48   :  { %v363_v40 = vadd.f32 %v362_v28, %v361_v32  ;;  %v243_v44 = vcombine.high %v113_v31, %v113_v31  ;;  %v489_v46 = vsel %vm334_vm0, %v112_v26, 0.0  ;;  %v490_v47 = vsel %vm334_vm0, %v242_v39, 0.0  ;;  %v119_v32 = vld [vmem:[#allocation3 + $0x158] sm:$0xff] }
  0x49   :  { %487 = vadd.xlane.f32.xlu1 %v486_v35  ;;  %v393_v45 = vadd.f32 %v392_v34, %v391_v38  ;;  %v492_v48 = vsel %vm334_vm0, %v113_v31, 0.0  ;;  %v221_v52 = vcombine.high %v91_v37, %v91_v37  ;;  %v396_v53 = vsel %vm334_vm0, %v220_v33, 0.0  ;;  %v97_v35 = vld [vmem:[#allocation3 + $0xa8] sm:$0xff] }
  0x4a   :  { %v365_v51 = vadd.f32 %v364_v36, %v363_v40  ;;  %v491_v55 = vadd.f32 %v490_v47, %v489_v46  ;;  %v398_v57 = vsel %vm334_vm0, %v91_v37, 0.0  ;;  %v244_v58 = vcombine.high %v114_v43, %v114_v43  ;;  %v98_v47 = vld [vmem:[#allocation3 + $0xb0] sm:$0xff] }
  0x4b   :  { %v395_v56 = vadd.f32 %v394_v42, %v393_v45  ;;  %v494_v59 = vsel %vm334_vm0, %v243_v44, 0.0  ;;  %v222_v62 = vcombine.high %v92_v49, %v92_v49  ;;  %v223_v63 = vcombine.high %v93_v50, %v93_v50 }
  0x4c   :  { %v367_v60 = vadd.f32 %v366_v41, %v365_v51  ;;  %v493_v61 = vadd.f32 %v492_v48, %v491_v55  ;;  %v245_v1 = vcombine.high %v115_v54, %v115_v54  ;;  %v496_v2 = vsel %vm334_vm0, %v114_v43, 0.0 }
  0x4d   :  { %v397_v0 = vadd.f32 %v396_v53, %v395_v56  ;;  %v404_v4 = vsel %vm334_vm0, %v92_v49, 0.0  ;;  %v400_v6 = vsel %vm348_vm1, %v221_v52, 0.0  ;;  %v405_v8 = vsel %vm334_vm0, %v222_v62, 0.0  ;;  %v120_v53 = vld [vmem:[#allocation3 + $0x160] sm:$0xff] }
  0x4e   :  { %368 = vadd.xlane.f32.xlu0 %v367_v60  ;;  %v495_v7 = vadd.f32 %v494_v59, %v493_v61  ;;  %v407_v9 = vsel %vm334_vm0, %v93_v50, 0.0  ;;  %v498_v12 = vsel %vm334_vm0, %v244_v58, 0.0  ;;  %v500_v13 = vsel %vm334_vm0, %v115_v54, 0.0  ;;  %v121_v54 = vld [vmem:[#allocation3 + $0x168] sm:$0xff] }
  0x4f   :  { %v399_v11 = vadd.f32 %v398_v57, %v397_v0  ;;  %v406_v14 = vadd.f32 %v405_v8, %v404_v4  ;;  %v224_v17 = vcombine.high %v94_v3, %v94_v3  ;;  %v409_v18 = vsel %vm334_vm0, %v223_v63, 0.0  ;;  %v99_v0 = vld [vmem:[#allocation3 + $0xb8] sm:$0xff]  ;;  %v122_v8 = vld [vmem:[#allocation3 + $0x170] sm:$0xff] }
  0x50   :  { %v497_v15 = vadd.f32 %v496_v2, %v495_v7  ;;  %v246_v19 = vcombine.high %v116_v5, %v116_v5  ;;  %v502_v21 = vsel %vm348_vm1, %v245_v1, 0.0  ;;  %v247_v24 = vcombine.high %v117_v10, %v117_v10 }
  0x51   :  { %v401_v20 = vadd.f32 %v400_v6, %v399_v11  ;;  %v408_v22 = vadd.f32 %v407_v9, %v406_v14  ;;  %v411_v26 = vsel %vm334_vm0, %v94_v3, 0.0  ;;  %v506_v27 = vsel %vm334_vm0, %v116_v5, 0.0  ;;  %v101_v14 = vld [vmem:[#allocation3 + $0xc8] sm:$0xff] }
  0x52   :  { %v499_v25 = vadd.f32 %v498_v12, %v497_v15  ;;  %v507_v28 = vsel %vm334_vm0, %v246_v19, 0.0  ;;  %v225_v30 = vcombine.high %v95_v16, %v95_v16  ;;  %v509_v34 = vsel %vm334_vm0, %v117_v10, 0.0 }
  0x53   :  { %402 = vadd.xlane.f32.xlu1 %v401_v20  ;;  %v410_v31 = vadd.f32 %v409_v18, %v408_v22  ;;  %v508_v33 = vadd.f32 %v507_v28, %v506_v27  ;;  %v413_v37 = vsel %vm334_vm0, %v224_v17, 0.0  ;;  %v248_v38 = vcombine.high %v118_v23, %v118_v23  ;;  %v123_v18 = vld [vmem:[#allocation3 + $0x178] sm:$0xff] }
  0x54   :  { %v501_v36 = vadd.f32 %v500_v13, %v499_v25  ;;  %v511_v39 = vsel %vm334_vm0, %v247_v24, 0.0  ;;  %v415_v41 = vsel %vm334_vm0, %v95_v16, 0.0  ;;  %v226_v43 = vcombine.high %v96_v29, %v96_v29  ;;  %v100_v13 = vld [vmem:[#allocation3 + $0xc0] sm:$0xff] }
  0x55   :  { %v412_v40 = vadd.f32 %v411_v26, %v410_v31  ;;  %v510_v42 = vadd.f32 %v509_v34, %v508_v33  ;;  %v249_v45 = vcombine.high %v119_v32, %v119_v32  ;;  %v513_v46 = vsel %vm334_vm0, %v118_v23, 0.0  ;;  %v102_v31 = vld [vmem:[#allocation3 + $0xd0] sm:$0xff]  ;;  %v124_v33 = vld [vmem:[#allocation3 + $0x180] sm:$0xff] }
  0x56   :  { %v503_v44 = vadd.f32 %v502_v21, %v501_v36  ;;  %v227_v48 = vcombine.high %v97_v35, %v97_v35  ;;  %v421_v51 = vsel %vm334_vm0, %v96_v29, 0.0  ;;  %v422_v52 = vsel %vm334_vm0, %v226_v43, 0.0 }
  0x57   :  { %v414_v49 = vadd.f32 %v413_v37, %v412_v40  ;;  %v512_v50 = vadd.f32 %v511_v39, %v510_v42  ;;  %v417_v55 = vsel %vm348_vm1, %v225_v30, 0.0  ;;  %v515_v56 = vsel %vm334_vm0, %v248_v38, 0.0  ;;  %v125_v38 = vld [vmem:[#allocation3 + $0x188] sm:$0xff] }
  0x58   :  { %504 = vadd.xlane.f32.xlu0 %v503_v44  ;;  %v423_v57 = vadd.f32 %v422_v52, %v421_v51  ;;  %v424_v58 = vsel %vm334_vm0, %v97_v35, 0.0  ;;  %v228_v61 = vcombine.high %v98_v47, %v98_v47  ;;  %v426_v62 = vsel %vm334_vm0, %v227_v48, 0.0  ;;  %v103_v44 = vld [vmem:[#allocation3 + $0xd8] sm:$0xff]  ;;  %v126_v51 = vld [vmem:[#allocation3 + $0x190] sm:$0xff] }
  0x59   :  { %v416_v59 = vadd.f32 %v415_v41, %v414_v49  ;;  %v514_v60 = vadd.f32 %v513_v46, %v512_v50  ;;  %v517_v63 = vsel %vm334_vm0, %v119_v32, 0.0  ;;  %v250_v2 = vcombine.high %v120_v53, %v120_v53 }
  0x5a   :  { %v425_v1 = vadd.f32 %v424_v58, %v423_v57  ;;  %v251_v3 = vcombine.high %v121_v54, %v121_v54  ;;  %v519_v6 = vsel %vm348_vm1, %v249_v45, 0.0  ;;  %v428_v7 = vsel %vm334_vm0, %v98_v47, 0.0  ;;  %v104_v57 = vld [vmem:[#allocation3 + $0xe0] sm:$0xff] }
  0x5b   :  { %v418_v4 = vadd.f32 %v417_v55, %v416_v59  ;;  %v516_v5 = vadd.f32 %v515_v56, %v514_v60  ;;  %v523_v10 = vsel %vm334_vm0, %v120_v53, 0.0  ;;  %v524_v11 = vsel %vm334_vm0, %v250_v2, 0.0  ;;  %v127_v60 = vld [vmem:[#allocation3 + $0x198] sm:$0xff] }
  0x5c   :  { %v427_v9 = vadd.f32 %v426_v62, %v425_v1  ;;  %v526_v12 = vsel %vm334_vm0, %v121_v54, 0.0  ;;  %v229_v16 = vcombine.high %v99_v0, %v99_v0  ;;  %v430_v17 = vsel %vm334_vm0, %v228_v61, 0.0 }
  0x5d   :  { %419 = vadd.xlane.f32.xlu1 %v418_v4  ;;  %v518_v15 = vadd.f32 %v517_v63, %v516_v5  ;;  %v525_v19 = vadd.f32 %v524_v11, %v523_v10  ;;  %v432_v21 = vsel %vm334_vm0, %v99_v0, 0.0  ;;  %v252_v22 = vcombine.high %v122_v8, %v122_v8  ;;  %v105_v63 = vld [vmem:[#allocation3 + $0xe8] sm:$0xff]  ;;  %v106_v11 = vld [vmem:[#allocation3 + $0xf0] sm:$0xff] }
  0x5e   :  { %v429_v20 = vadd.f32 %v428_v7, %v427_v9  ;;  %v528_v23 = vsel %vm334_vm0, %v251_v3, 0.0  ;;  %v230_v26 = vcombine.high %v100_v13, %v100_v13  ;;  %v231_v27 = vcombine.high %v101_v14, %v101_v14 }
  0x5f   :  { %v520_v24 = vadd.f32 %v519_v6, %v518_v15  ;;  %v527_v25 = vadd.f32 %v526_v12, %v525_v19  ;;  %v253_v29 = vcombine.high %v123_v18, %v123_v18  ;;  %v530_v30 = vsel %vm334_vm0, %v122_v8, 0.0 }
  0x60   :  { %v431_v28 = vadd.f32 %v430_v17, %v429_v20  ;;  %v438_v32 = vsel %vm334_vm0, %v100_v13, 0.0  ;;  %v434_v34 = vsel %vm348_vm1, %v229_v16, 0.0  ;;  %v439_v36 = vsel %vm334_vm0, %v230_v26, 0.0  ;;  %v128_v17 = vld [vmem:[#allocation3 + $0x1a0] sm:$0xff] }
  0x61   :  { %521 = vadd.xlane.f32.xlu0 %v520_v24  ;;  %v529_v35 = vadd.f32 %v528_v23, %v527_v25  ;;  %v441_v37 = vsel %vm334_vm0, %v101_v14, 0.0  ;;  %v532_v40 = vsel %vm334_vm0, %v252_v22, 0.0  ;;  %v534_v41 = vsel %vm334_vm0, %v123_v18, 0.0  ;;  %v129_v18 = vld [vmem:[#allocation3 + $0x1a8] sm:$0xff] }
  0x62   :  { %v433_v39 = vadd.f32 %v432_v21, %v431_v28  ;;  %v440_v42 = vadd.f32 %v439_v36, %v438_v32  ;;  %v232_v45 = vcombine.high %v102_v31, %v102_v31  ;;  %v443_v46 = vsel %vm334_vm0, %v231_v27, 0.0  ;;  %v107_v28 = vld [vmem:[#allocation3 + $0xf8] sm:$0xff]  ;;  %v130_v36 = vld [vmem:[#allocation3 + $0x1b0] sm:$0xff] }
  0x63   :  { %v531_v43 = vadd.f32 %v530_v30, %v529_v35  ;;  %v254_v47 = vcombine.high %v124_v33, %v124_v33  ;;  %v536_v49 = vsel %vm348_vm1, %v253_v29, 0.0  ;;  %v255_v52 = vcombine.high %v125_v38, %v125_v38 }
  0x64   :  { %v435_v48 = vadd.f32 %v434_v34, %v433_v39  ;;  %v442_v50 = vadd.f32 %v441_v37, %v440_v42  ;;  %v445_v54 = vsel %vm334_vm0, %v102_v31, 0.0  ;;  %v540_v55 = vsel %vm334_vm0, %v124_v33, 0.0  ;;  %v133_v42 = vld [vmem:[#allocation3 + $0x1c8] sm:$0xff] }
  0x65   :  { %v533_v53 = vadd.f32 %v532_v40, %v531_v43  ;;  %v541_v56 = vsel %vm334_vm0, %v254_v47, 0.0  ;;  %v233_v58 = vcombine.high %v103_v44, %v103_v44  ;;  %v543_v62 = vsel %vm334_vm0, %v125_v38, 0.0 }
  0x66   :  { %436 = vadd.xlane.f32.xlu1 %v435_v48  ;;  %v444_v59 = vadd.f32 %v443_v46, %v442_v50  ;;  %v542_v61 = vadd.f32 %v541_v56, %v540_v55  ;;  %v447_v1 = vsel %vm334_vm0, %v232_v45, 0.0  ;;  %v256_v2 = vcombine.high %v126_v51, %v126_v51  ;;  %v131_v46 = vld [vmem:[#allocation3 + $0x1b8] sm:$0xff] }
  0x67   :  { %v535_v0 = vadd.f32 %v534_v41, %v533_v53  ;;  %v545_v3 = vsel %vm334_vm0, %v255_v52, 0.0  ;;  %v449_v5 = vsel %vm334_vm0, %v103_v44, 0.0  ;;  %v234_v7 = vcombine.high %v104_v57, %v104_v57  ;;  %v132_v41 = vld [vmem:[#allocation3 + $0x1c0] sm:$0xff] }
  0x68   :  { %v446_v4 = vadd.f32 %v445_v54, %v444_v59  ;;  %v544_v6 = vadd.f32 %v543_v62, %v542_v61  ;;  %v257_v9 = vcombine.high %v127_v60, %v127_v60  ;;  %v547_v10 = vsel %vm334_vm0, %v126_v51, 0.0  ;;  %v134_v59 = vld [vmem:[#allocation3 + $0x1d0] sm:$0xff]  ;;  %v136_v61 = vld [vmem:[#allocation3 + $0x1e0] sm:$0xff] }
  0x69   :  { %v537_v8 = vadd.f32 %v536_v49, %v535_v0  ;;  %v235_v12 = vcombine.high %v105_v63, %v105_v63  ;;  %v455_v15 = vsel %vm334_vm0, %v104_v57, 0.0  ;;  %v456_v16 = vsel %vm334_vm0, %v234_v7, 0.0 }
  0x6a   :  { %v448_v13 = vadd.f32 %v447_v1, %v446_v4  ;;  %v546_v14 = vadd.f32 %v545_v3, %v544_v6  ;;  %v451_v19 = vsel %vm348_vm1, %v233_v58, 0.0  ;;  %v549_v20 = vsel %vm334_vm0, %v256_v2, 0.0  ;;  %v137_v2 = vld [vmem:[#allocation3 + $0x1e8] sm:$0xff] }
  0x6b   :  { %538 = vadd.xlane.f32.xlu0 %v537_v8  ;;  %v457_v21 = vadd.f32 %v456_v16, %v455_v15  ;;  %v458_v22 = vsel %vm334_vm0, %v105_v63, 0.0  ;;  %v236_v25 = vcombine.high %v106_v11, %v106_v11  ;;  %v460_v26 = vsel %vm334_vm0, %v235_v12, 0.0  ;;  %v135_v8 = vld [vmem:[#allocation3 + $0x1d8] sm:$0xff]  ;;  %v138_v15 = vld [vmem:[#allocation3 + $0x1f0] sm:$0xff] }
  0x6c   :  { %v450_v23 = vadd.f32 %v449_v5, %v448_v13  ;;  %v548_v24 = vadd.f32 %v547_v10, %v546_v14  ;;  %v551_v27 = vsel %vm334_vm0, %v127_v60, 0.0  ;;  %v258_v30 = vcombine.high %v128_v17, %v128_v17 }
  0x6d   :  { %v459_v29 = vadd.f32 %v458_v22, %v457_v21  ;;  %v259_v31 = vcombine.high %v129_v18, %v129_v18  ;;  %v553_v34 = vsel %vm348_vm1, %v257_v9, 0.0  ;;  %v462_v35 = vsel %vm334_vm0, %v106_v11, 0.0 }
  0x6e   :  { %v452_v32 = vadd.f32 %v451_v19, %v450_v23  ;;  %v550_v33 = vadd.f32 %v549_v20, %v548_v24  ;;  %v557_v38 = vsel %vm334_vm0, %v128_v17, 0.0  ;;  %v558_v39 = vsel %vm334_vm0, %v258_v30, 0.0  ;;  %v139_v30 = vld [vmem:[#allocation3 + $0x1f8] sm:$0xff] }
  0x6f   :  { %v461_v37 = vadd.f32 %v460_v26, %v459_v29  ;;  %v560_v40 = vsel %vm334_vm0, %v129_v18, 0.0  ;;  %v237_v44 = vcombine.high %v107_v28, %v107_v28  ;;  %v464_v45 = vsel %vm334_vm0, %v236_v25, 0.0 }
  0x70   :  { %453 = vadd.xlane.f32.xlu1 %v452_v32  ;;  %v552_v43 = vadd.f32 %v551_v27, %v550_v33  ;;  %v559_v47 = vadd.f32 %v558_v39, %v557_v38  ;;  %v466_v49 = vsel %vm334_vm0, %v107_v28, 0.0  ;;  %v260_v50 = vcombine.high %v130_v36, %v130_v36 }
  0x71   :  { %v463_v48 = vadd.f32 %v462_v35, %v461_v37  ;;  %v562_v51 = vsel %vm334_vm0, %v259_v31, 0.0  ;;  %v262_v54 = vcombine.high %v132_v41, %v132_v41  ;;  %v263_v55 = vcombine.high %v133_v42, %v133_v42 }
  0x72   :  { %v554_v52 = vadd.f32 %v553_v34, %v552_v43  ;;  %v561_v53 = vadd.f32 %v560_v40, %v559_v47  ;;  %v261_v57 = vcombine.high %v131_v46, %v131_v46  ;;  %v564_v58 = vsel %vm334_vm0, %v130_v36, 0.0 }
  0x73   :  { %v465_v56 = vadd.f32 %v464_v45, %v463_v48  ;;  %v574_v60 = vsel %vm334_vm0, %v132_v41, 0.0  ;;  %v468_v62 = vsel %vm348_vm1, %v237_v44, 0.0  ;;  %v575_v0 = vsel %vm334_vm0, %v262_v54, 0.0 }
  0x74   :  { %555 = vadd.xlane.f32.xlu0 %v554_v52  ;;  %v563_v63 = vadd.f32 %v562_v51, %v561_v53  ;;  %v577_v1 = vsel %vm334_vm0, %v133_v42, 0.0  ;;  %v566_v4 = vsel %vm334_vm0, %v260_v50, 0.0  ;;  %v568_v5 = vsel %vm334_vm0, %v131_v46, 0.0 }
  0x75   :  { %v467_v3 = vadd.f32 %v466_v49, %v465_v56  ;;  %v576_v6 = vadd.f32 %v575_v0, %v574_v60  ;;  %v264_v9 = vcombine.high %v134_v59, %v134_v59  ;;  %v579_v10 = vsel %vm334_vm0, %v263_v55, 0.0  ;;  %v725_v49 = vld [vmem:[#allocation6] sm:$0xf] }
  0x76   :  { %v565_v7 = vadd.f32 %v564_v58, %v563_v63  ;;  %v266_v11 = vcombine.high %v136_v61, %v136_v61  ;;  %v570_v13 = vsel %vm348_vm1, %v261_v57, 0.0  ;;  %v267_v16 = vcombine.high %v137_v2, %v137_v2  ;;  %1002 = vmatprep.subr.msk.mxu0 %vm334_vm0, %v725_v49 }
  0x77   :  { %v469_v12 = vadd.f32 %v468_v62, %v467_v3  ;;  %v578_v14 = vadd.f32 %v577_v1, %v576_v6  ;;  %v581_v18 = vsel %vm334_vm0, %v134_v59, 0.0  ;;  %v591_v19 = vsel %vm334_vm0, %v136_v61, 0.0  ;;  %1003 = vmatpush3.msk.msra.mxu0 %vm334_vm0, %v725_v49  ;;  %v737_v49 = vld [vmem:[#allocation9 + $0x50] sm:$0xff] }
  0x78   :  { %v567_v17 = vadd.f32 %v566_v4, %v565_v7  ;;  %v592_v20 = vsel %vm334_vm0, %v266_v11, 0.0  ;;  %v265_v21 = vcombine.high %v135_v8, %v135_v8  ;;  %v594_v24 = vsel %vm334_vm0, %v137_v2, 0.0 }
  0x79   :  { %470 = vadd.xlane.f32.xlu1 %v469_v12  ;;  %v580_v22 = vadd.f32 %v579_v10, %v578_v14  ;;  %v593_v23 = vadd.f32 %v592_v20, %v591_v19  ;;  %v583_v26 = vsel %vm334_vm0, %v264_v9, 0.0  ;;  %v268_v27 = vcombine.high %v138_v15, %v138_v15 }
  0x7a   :  { %v569_v25 = vadd.f32 %v568_v5, %v567_v17  ;;  %v596_v28 = vsel %vm334_vm0, %v267_v16, 0.0  ;;  %v585_v33 = vsel %vm334_vm0, %v135_v8, 0.0  ;;  %v598_v34 = vsel %vm334_vm0, %v138_v15, 0.0 }
  0x7b   :  { %v582_v29 = vadd.f32 %v581_v18, %v580_v22  ;;  %v595_v31 = vadd.f32 %v594_v24, %v593_v23  ;;  %v587_v37 = vsel %vm348_vm1, %v265_v21, 0.0  ;;  %v269_v38 = vcombine.high %v139_v30, %v139_v30 }
  0x7c   :  { %v571_v32 = vadd.f32 %v570_v13, %v569_v25  ;;  %v600_v39 = vsel %vm334_vm0, %v268_v27, 0.0  ;;  %v602_v42 = vsel %vm334_vm0, %v139_v30, 0.0  ;;  %vm73_vm2 = vcmask 31744  }
  0x7d   :  { %v584_v35 = vadd.f32 %v583_v26, %v582_v29  ;;  %v597_v36 = vadd.f32 %v596_v28, %v595_v31  ;;  %v1238_v45 = vmov 0.0   ;;  %v604_v46 = vsel %vm348_vm1, %v269_v38, 0.0 }
  0x7e   :  { %572 = vadd.xlane.f32.xlu0 %v571_v32  ;;  %74 = vst.msk [vmem:[#allocation2] sm:$0xff] %vm73_vm2, %v1238_v45  ;;  %75 = vst.msk [vmem:[#allocation2 + $0x8] sm:$0xff] %vm73_vm2, %v1238_v45  ;;  %v624_v55 = vlaneseq  ;;  %vm690_vm3 = vcmask 1041409   ;;  %vm692_vm4 = vcmask 1042434   ;;  %vm694_vm5 = vcmask 1043459   ;;  %v741_v45 = vld [vmem:[#allocation9 + $0x70] sm:$0xff] }
  0x7f   :  { %v586_v40 = vadd.f32 %v585_v33, %v584_v35  ;;  %v599_v41 = vadd.f32 %v598_v34, %v597_v36  ;;  %vm696_vm6 = vcmask 1044484   ;;  %vm698_vm7 = vcmask 1045509  }
  0x80   :  { %v625_v58 = vand.u32 127, %v624_v55  ;;  %v1412_v59 = vshrl.u32 %v624_v55, 7  ;;  %vm700_vm8 = vcmask 1046534   ;;  %vm702_vm9 = vcmask 1047559   ;;  %v731_v55 = vld [vmem:[#allocation9 + $0x20] sm:$0xff] }
  0x81   :  { %v588_v43 = vadd.f32 %v587_v37, %v586_v40  ;;  %v601_v44 = vadd.f32 %v600_v39, %v599_v41 }
  0x82   :  { %v628_v62 = vsub.s32 %v625_v58, %v1412_v59  ;;  %v728_v58 = vld [vmem:[#allocation9 + $0x8] sm:$0xff] }
  0x83   :  { %589 = vadd.xlane.f32.xlu0 %v588_v43  ;;  %v603_v47 = vadd.f32 %v602_v42, %v601_v44  ;;  %v742_v44 = vld [vmem:[#allocation9 + $0x78] sm:$0xff] }
  0x84   :  { %1007 = vmatprep.subr.mxu1 %v742_v44 }
  0x85   :  { %v605_v48 = vadd.f32 %v604_v46, %v603_v47  ;;  %v140_v15 = vld [vmem:[#allocation2] sm:$0xff]  ;;  %v141_v38 = vld [vmem:[#allocation2 + $0x8] sm:$0xff]  ;;  %1008 = vmatpush3.msra.mxu1 %v742_v44  ;;  %v739_v47 = vld [vmem:[#allocation9 + $0x60] sm:$0xff] }
  0x86   :  { %1009 = vmatprep.subr.mxu1 %v741_v45  ;;  %v740_v46 = vld [vmem:[#allocation9 + $0x68] sm:$0xff] }
  0x87   :  { %606 = vadd.xlane.f32.xlu1 %v605_v48  ;;  %1010 = vmatpush3.msra.mxu1 %v741_v45  ;;  %v738_v48 = vld [vmem:[#allocation9 + $0x58] sm:$0xff] }
  0x88   :  { %1011 = vmatprep.subr.mxu1 %v740_v46 }
  0x89   :  { %1012 = vmatpush3.msra.mxu1 %v740_v46 }
  0x8a   :  { %1013 = vmatprep.subr.mxu1 %v739_v47 }
  0x8b   :  { %1014 = vmatpush3.msra.mxu1 %v739_v47 }
  0x8c   :  { %1015 = vmatprep.subr.mxu1 %v738_v48 }
  0x8d   :  { %1016 = vmatpush3.msra.mxu1 %v738_v48 }
  0x8e   :  { %1017 = vmatprep.subr.mxu1 %v737_v49 }
  0x8f   :  { %1018 = vmatpush3.msra.mxu1 %v737_v49 }
  0xcd   :  { %v386_v50 = vpop.xlane.xlu1 %385 }
  0xce   :  { %v352_v51 = vpop.xlane.xlu0 %351  ;;  %v637_v5 = vrot.slane %v386_v50, %v628_v62  ;;  %v736_v50 = vld [vmem:[#allocation9 + $0x48] sm:$0xff] }
  0xcf   :  { %v629_v0 = vrot.slane %v352_v51, %v628_v62  ;;  %v735_v51 = vld [vmem:[#allocation9 + $0x40] sm:$0xff]  ;;  %1019 = vmatprep.subr.mxu1 %v736_v50 }
  0xd0   :  { %1020 = vmatpush3.msra.mxu1 %v736_v50 }
  0xd1   :  { %1021 = vmatprep.subr.mxu1 %v735_v51 }
  0xd2   :  { %v488_v52 = vpop.xlane.xlu1 %487  ;;  %1022 = vmatpush3.msra.mxu1 %v735_v51 }
  0xd3   :  { %v661_v23 = vrot.slane %v488_v52, %v628_v62  ;;  %v734_v52 = vld [vmem:[#allocation9 + $0x38] sm:$0xff] }
  0xd4   :  { %1023 = vmatprep.subr.mxu1 %v734_v52 }
  0xd5   :  { %1024 = vmatpush3.msra.mxu1 %v734_v52 }
  0xd7   :  { %v369_v53 = vpop.xlane.xlu0 %368 }
  0xd8   :  { %v633_v63 = vrot.slane %v369_v53, %v628_v62  ;;  %v733_v53 = vld [vmem:[#allocation9 + $0x30] sm:$0xff] }
  0xd9   :  { %1025 = vmatprep.subr.mxu1 %v733_v53 }
  0xda   :  { %v691_v3 = vsel %vm690_vm3, %v633_v63, %v629_v0  ;;  %1026 = vmatpush3.msra.mxu1 %v733_v53 }
  0xdb   :  { %v693_v8 = vsel %vm692_vm4, %v637_v5, %v691_v3 }
  0xdc   :  { %v403_v54 = vpop.xlane.xlu1 %402 }
  0xdd   :  { %v641_v4 = vrot.slane %v403_v54, %v628_v62  ;;  %v732_v54 = vld [vmem:[#allocation9 + $0x28] sm:$0xff] }
  0xde   :  { %1027 = vmatprep.subr.mxu1 %v732_v54 }
  0xdf   :  { %v695_v10 = vsel %vm694_vm5, %v641_v4, %v693_v8  ;;  %1028 = vmatpush3.msra.mxu1 %v732_v54 }
  0xe0   :  { %1029 = vmatprep.subr.mxu1 %v731_v55 }
  0xe1   :  { %v505_v56 = vpop.xlane.xlu0 %504  ;;  %1030 = vmatpush3.msra.mxu1 %v731_v55 }
  0xe2   :  { %v665_v20 = vrot.slane %v505_v56, %v628_v62  ;;  %v730_v56 = vld [vmem:[#allocation9 + $0x18] sm:$0xff] }
  0xe3   :  { %1031 = vmatprep.subr.mxu1 %v730_v56 }
  0xe4   :  { %v704_v26 = vsel %vm690_vm3, %v665_v20, %v661_v23  ;;  %1032 = vmatpush3.msra.mxu1 %v730_v56 }
  0xe6   :  { %v420_v57 = vpop.xlane.xlu1 %419 }
  0xe7   :  { %v645_v6 = vrot.slane %v420_v57, %v628_v62  ;;  %v729_v57 = vld [vmem:[#allocation9 + $0x10] sm:$0xff] }
  0xe8   :  { %1033 = vmatprep.subr.mxu1 %v729_v57 }
  0xe9   :  { %v697_v12 = vsel %vm696_vm6, %v645_v6, %v695_v10  ;;  %1034 = vmatpush3.msra.mxu1 %v729_v57 }
  0xea   :  { %v522_v60 = vpop.xlane.xlu0 %521  ;;  %1035 = vmatprep.subr.mxu1 %v728_v58 }
  0xeb   :  { %v669_v22 = vrot.slane %v522_v60, %v628_v62  ;;  %v727_v60 = vld [vmem:[#allocation9] sm:$0xff]  ;;  %1036 = vmatpush3.msra.mxu1 %v728_v58 }
  0xec   :  { %1037 = vmatprep.subr.mxu1 %v727_v60 }
  0xed   :  { %v705_v28 = vsel %vm692_vm4, %v669_v22, %v704_v26  ;;  %1038 = vmatpush3.msra.mxu1 %v727_v60  ;;  %v864_v26 = vsub.s32 2, %v1412_v59 }
  0xef   :  { %v437_v61 = vpop.xlane.xlu1 %436 }
  0xf0   :  { %v649_v7 = vrot.slane %v437_v61, %v628_v62  ;;  %v745_v61 = vsub.s32 0, %v1412_v59 }
  0xf2   :  { %v699_v14 = vsel %vm698_vm7, %v649_v7, %v697_v12 }
  0xf4   :  { %v539_v1 = vpop.xlane.xlu0 %538 }
  0xf5   :  { %v673_v24 = vrot.slane %v539_v1, %v628_v62 }
  0xf7   :  { %v706_v30 = vsel %vm694_vm5, %v673_v24, %v705_v28 }
  0xf9   :  { %v454_v2 = vpop.xlane.xlu1 %453 }
  0xfa   :  { %v653_v9 = vrot.slane %v454_v2, %v628_v62 }
  0xfc   :  { %v701_v17 = vsel %vm700_vm8, %v653_v9, %v699_v14 }
  0xfd   :  { %v556_v11 = vpop.xlane.xlu0 %555 }
  0xfe   :  { %v677_v25 = vrot.slane %v556_v11, %v628_v62 }
 0x100   :  { %v707_v32 = vsel %vm696_vm6, %v677_v25, %v706_v30  ;;  %v858_v25 = vsub.s32 1, %v1412_v59 }
 0x102   :  { %v471_v13 = vpop.xlane.xlu1 %470 }
 0x103   :  { %v657_v16 = vrot.slane %v471_v13, %v628_v62 }
 0x105   :  { %v703_v18 = vsel %vm702_vm9, %v657_v16, %v701_v17 }
 0x106   :  { %v713_v19 = vadd.f32 %v703_v18, %v140_v15 }
 0x107   :  { %v573_v21 = vpop.xlane.xlu0 %572 }
 0x108   :  { %716 = vst.msk [vmem:[#allocation2] sm:$0xff] %vm73_vm2, %v713_v19  ;;  %v681_v27 = vrot.slane %v573_v21, %v628_v62 }
 0x10a   :  { %v708_v33 = vsel %vm698_vm7, %v681_v27, %v707_v32 }
 0x10c   :  { %v590_v29 = vpop.xlane.xlu0 %589 }
 0x10d   :  { %v685_v31 = vrot.slane %v590_v29, %v628_v62 }
 0x10f   :  { %v721_v34 = vld [vmem:[#allocation2] sm:$0xff]  ;;  %v709_v35 = vsel %vm700_vm8, %v685_v31, %v708_v33 }
 0x110   :  { %v607_v36 = vpop.xlane.xlu1 %606  ;;  %v723_v37 = vmul.f32 0.001, %v721_v34 }
 0x111   :  { %v689_v39 = vrot.slane %v607_v36, %v628_v62  ;;  %v726_v62 = vld [vmem:[#allocation8] sm:$0x7] }
 0x112   :  { %1004 = vmatprep.mubr.msk.f32.mxu0 %vm73_vm2, %v723_v37  ;;  %v746_v63 = vrot.slane %v726_v62, %v745_v61  ;;  %v859_v27 = vrot.slane %v726_v62, %v858_v25  ;;  %v865_v30 = vrot.slane %v726_v62, %v864_v26 }
 0x113   :  { %v710_v40 = vsel %vm702_vm9, %v689_v39, %v709_v35 }
 0x114   :  { %v714_v41 = vadd.f32 %v710_v40, %v141_v38 }
 0x116   :  { %717 = vst.msk [vmem:[#allocation2 + $0x8] sm:$0xff] %vm73_vm2, %v714_v41 }
 0x11d   :  { %v722_v42 = vld [vmem:[#allocation2 + $0x8] sm:$0xff] }
 0x11e   :  { %v724_v43 = vmul.f32 0.001, %v722_v42 }
 0x120   :  { %1005 = vmatmul.mubr.msk.f32.vlgmr.msra.gmra.mxu0 %vm73_vm2, %v724_v43 }
 0x1e0   :  { %v1006_v0 = vpop.f32.mrf.mxu0 }
 0x1e1   :  { %v828_v2 = vadd.f32 %v1006_v0, %v746_v63 }
 0x1e2   :  { %v822_v1 = vpop.f32.mrf.mxu0 }
 0x1e3   :  { %v823_v3 = vadd.f32 %v822_v1, %v746_v63 }
 0x1e5   :  { %v831_v4 = vadd.f32 %v828_v2, %v823_v3 }
 0x1e7   :  { %v832_v5 = vrot.slane %v831_v4, 4 }
 0x1e9   :  { %v833_v6 = vadd.f32 %v832_v5, %v831_v4 }
 0x1eb   :  { %v834_v7 = vrot.slane %v833_v6, 2 }
 0x1ed   :  { %v835_v8 = vadd.f32 %v834_v7, %v833_v6 }
 0x1ef   :  { %v836_v9 = vrot.slane %v835_v8, 1 }
 0x1f1   :  { %v837_v10 = vadd.f32 %v836_v9, %v835_v8 }
 0x1f3   :  { %v839_v11 = vmul.f32 0.0625, %v837_v10 }
 0x1f5   :  { %v840_v12 = vsub.f32 %v823_v3, %v839_v11  ;;  %v841_v13 = vsub.f32 %v828_v2, %v839_v11 }
 0x1f7   :  { %v842_v14 = vmul.f32 %v840_v12, %v840_v12  ;;  %v843_v15 = vmul.f32 %v841_v13, %v841_v13 }
 0x1f9   :  { %v844_v16 = vadd.f32 %v843_v15, %v842_v14 }
 0x1fb   :  { %v845_v17 = vrot.slane %v844_v16, 4 }
 0x1fd   :  { %v846_v18 = vadd.f32 %v845_v17, %v844_v16 }
 0x1ff   :  { %v847_v19 = vrot.slane %v846_v18, 2 }
 0x201   :  { %v848_v20 = vadd.f32 %v847_v19, %v846_v18 }
 0x203   :  { %v849_v21 = vrot.slane %v848_v20, 1 }
 0x205   :  { %v850_v22 = vadd.f32 %v849_v21, %v848_v20 }
 0x207   :  { %v851_v23 = vmul.f32 0.0625, %v850_v22 }
 0x209   :  { %v852_v24 = vadd.f32 1e-05, %v851_v23 }
 0x20b   :  { %1116 = vrsqrt.f32 %v852_v24 }
 0x218   :  { %v1117_v28 = vpop.eup %1116 }
 0x219   :  { %v854_v29 = vmul.f32 %v1117_v28, %v840_v12  ;;  %v855_v31 = vmul.f32 %v1117_v28, %v841_v13 }
 0x21b   :  { %v860_v32 = vmul.f32 %v859_v27, %v854_v29  ;;  %v861_v33 = vmul.f32 %v859_v27, %v855_v31 }
 0x21d   :  { %v866_v34 = vadd.f32 %v865_v30, %v860_v32  ;;  %v867_v35 = vadd.f32 %v865_v30, %v861_v33 }
 0x21f   :  { %v868_v36 = vmax.f32 %v866_v34, 0.0  ;;  %v869_v37 = vmax.f32 %v867_v35, 0.0 }
 0x221   :  { %1039 = vmatprep.mubr.f32.mxu1 %v868_v36 }
 0x222   :  { %1040 = vmatmul.mubr.f32.vlgmr.msra.gmra.mxu1 %v869_v37 }
 0x2e2   :  { %v1041_v38 = vpop.f32.mrf.mxu1 }
 0x2e3   :  { %v946_v39 = vmul.f32 %v1041_v38, %v1041_v38 }
 0x2e4   :  { %v936_v40 = vpop.f32.mrf.mxu1 }
 0x2e5   :  { %v945_v41 = vmul.f32 %v936_v40, %v936_v40  ;;  %949 = vadd.xlane.f32.xlu1 %v946_v39 }
 0x2e7   :  { %947 = vadd.xlane.f32.xlu0 %v945_v41 }
 0x36e   :  { %v950_v59 = vpop.xlane.xlu1 %949 }
 0x36f   :  { %v952_v42 = vmax.f32 %v950_v59, 1e-24 }
 0x370   :  { %v948_v43 = vpop.xlane.xlu0 %947 }
 0x371   :  { %1118 = vrsqrt.f32 %v952_v42  ;;  %v951_v44 = vmax.f32 %v948_v43, 1e-24 }
 0x373   :  { %1120 = vrsqrt.f32 %v951_v44 }
 0x37e   :  { %v1119_v45 = vpop.eup %1118 }
 0x37f   :  { %v956_v46 = vmul.f32 %v1119_v45, %v1041_v38 }
 0x380   :  { %v1121_v47 = vpop.eup %1120 }
 0x381   :  { %v955_v48 = vmul.f32 %v1121_v47, %v936_v40  ;;  %958 = vst [vmem:[#allocation11 + $0x8] sm:$0xff] %v956_v46 }
 0x383   :  { %957 = vst [vmem:[#allocation11] sm:$0xff] %v955_v48 }
 0x384   :  { %1213 = shalt.err (!%p1210_p10)
}
 0x385   :  { %970 = dma.vmem_to_hbm [thread:$0]  %s965_s3, 256, %s1446_s4, [#allocation5], %s1236_s0, %s1236_s0, %s1237_s8  }
 0x386   :  { %1228 = dma.done.wait [#allocation5], 256  }
 0x387   :  { %1229 = vsyncadd [#allocation5], 4294967040 }
 0x388   :  { %974 = vsyncpa [#allocation4], 1 }
 0x389   :  { %975 = vsyncpa [#allocation7], 1 }
 0x38a   :  { %976 = vsyncpa [#allocation10], 1 }
 0x38b   :  { %977 = vsyncpa [#allocation5], 1 }

</bundles_post_ra>
